<compile_context>
chip_gen: v7x
topology: tpu7x:2x2x1
jax: 0.10.0
libtpu: 0.0.40
codegen_flags: <defaults>
</compile_context>

<pallas_src>
import functools

import jax
import jax.numpy as jnp
from jax.experimental import pallas as pl
from jax.experimental.pallas import tpu as pltpu


def _sobelxy_kernel(x_ref, o_ref, *, w):
    """Separable Sobel on a (Bt, L) block where L = H*W (one image per row)."""
    x = x_ref[...].astype(jnp.float32)          # (Bt, L), cast under the DMA
    bt, l = x.shape

    # Flattened pixel index within each image (lane-direction iota).
    k = jax.lax.broadcasted_iota(jnp.int32, (bt, l), 1)
    if (w & (w - 1)) == 0:                      # column index j = k mod W
        col = k & (w - 1)
    else:
        col = k % w

    # pltpu.roll matches jnp.roll: roll(x, s)[k] = x[(k - s) mod L]; shifts kept
    # non-negative. Wrapped values are exactly the conv "padding=1" zeros -> mask.
    left = jnp.where(col > 0, pltpu.roll(x, 1, axis=1), 0.0)          # x[i, j-1]
    right = jnp.where(col < w - 1, pltpu.roll(x, l - 1, axis=1), 0.0)  # x[i, j+1]

    d = right - left                     # column pass [-1, 0, 1]
    s = left + 2.0 * x + right           # column pass [ 1, 2, 1]

    not_top = k >= w                     # row i >= 1  (zero halo above)
    not_bot = k < l - w                  # row i <= H-2 (zero halo below)

    up_d = jnp.where(not_top, pltpu.roll(d, w, axis=1), 0.0)          # d[i-1, j]
    down_d = jnp.where(not_bot, pltpu.roll(d, l - w, axis=1), 0.0)    # d[i+1, j]
    gx = up_d + 2.0 * d + down_d         # row pass [1, 2, 1]^T

    up_s = jnp.where(not_top, pltpu.roll(s, w, axis=1), 0.0)          # s[i-1, j]
    down_s = jnp.where(not_bot, pltpu.roll(s, l - w, axis=1), 0.0)    # s[i+1, j]
    gy = up_s - down_s                   # row pass [1, 0, -1]^T

    o_ref[...] = (jnp.abs(gx) + jnp.abs(gy)).astype(o_ref.dtype)


def _pick_batch_tile(batch, cap):
    """Largest batch tile <= cap, preferring sublane-aligned (mult of 8) divisors."""
    cap = max(1, min(cap, batch))
    for d in range(cap, 0, -1):                 # sublane-aligned divisor
        if batch % d == 0 and d % 8 == 0:
            return d
    if batch <= cap:                            # full batch dim is always layout-legal
        return batch
    for d in range(cap, 0, -1):                 # fallback: any divisor (Pallas pads sublanes)
        if batch % d == 0:
            return d
    return 1


def sobelxy(x, *, target_block_bytes=4 << 20):
    """Pallas TPU equivalent of Sobelxy.forward: x (N, 1, H, W) -> (N, 1, H, W)."""
    b, c, h, w = x.shape
    assert c == 1, "Sobelxy operates on single-channel input (conv weight is 1x1x3x3)"
    l = h * w
    xf = x.reshape(b, l)                        # lane-dense; contiguous reshape (free), no cast

    itemsize = jnp.dtype(x.dtype).itemsize
    img_bytes = max(1, l * itemsize)
    bt_cap = max(1, target_block_bytes // img_bytes)
    if b >= 16:
        # Keep >= 2 grid steps so both v7x TensorCores get work on the "parallel" axis.
        bt_cap = min(bt_cap, b // 2)
    bt = _pick_batch_tile(b, bt_cap)
    grid = (b // bt,)

    spec = pl.BlockSpec((bt, l), lambda i: (i, 0))

    # Tight live-set estimate: double-buffered in + out blocks plus ~10 f32 temporaries
    # (x, left/right, d, s, 4 rolled terms, gx/gy, masks). Cap below v7x's 64 MiB VMEM.
    in_block = bt * l * itemsize
    out_block = bt * l * itemsize
    f32_block = bt * l * 4
    vmem_limit = int(min(max(2 * in_block + 2 * out_block + 10 * f32_block, 16 << 20),
                         56 << 20))

    out = pl.pallas_call(
        functools.partial(_sobelxy_kernel, w=w),
        out_shape=jax.ShapeDtypeStruct((b, l), x.dtype),
        grid=grid,
        in_specs=[spec],
        out_specs=spec,
        compiler_params=pltpu.CompilerParams(
            dimension_semantics=("parallel",),   # independent batch blocks (2 TCs on v7x)
            vmem_limit_bytes=vmem_limit,
        ),
        cost_estimate=pl.CostEstimate(
            flops=12 * b * l,
            transcendentals=0,
            bytes_accessed=2 * b * l * itemsize,
        ),
    )(xf)
    return out.reshape(b, 1, h, w)


def _sobelxy_ref(x):
    """Pure-JAX reference (explicit zero-padded cross-correlation)."""
    kx = jnp.array([[-1., 0., 1.], [-2., 0., 2.], [-1., 0., 1.]], jnp.float32)
    ky = jnp.array([[1., 2., 1.], [0., 0., 0.], [-1., -2., -1.]], jnp.float32)
    xf = x[:, 0].astype(jnp.float32)
    b, h, w = xf.shape
    xp = jnp.pad(xf, ((0, 0), (1, 1), (1, 1)))
    gx = jnp.zeros_like(xf)
    gy = jnp.zeros_like(xf)
    for di in range(3):
        for dj in range(3):
            win = xp[:, di:di + h, dj:dj + w]
            gx = gx + kx[di, dj] * win
            gy = gy + ky[di, dj] * win
    return (jnp.abs(gx) + jnp.abs(gy))[:, None, :, :]


if __name__ == "__main__":
    key = jax.random.PRNGKey(0)
    B, C, H, W = 2, 1, 16, 16
    x = jax.random.uniform(key, (B, C, H, W), dtype=jnp.float32)

    out = jax.block_until_ready(sobelxy(x))
    ref = _sobelxy_ref(x)

    assert out.shape == (B, 1, H, W), out.shape
    assert out.dtype == x.dtype, out.dtype
    err = float(jnp.max(jnp.abs(out - ref)))
    assert err < 1e-4, err
    print("KERNEL_OK")
</pallas_src>

<mosaic_0001>
module attributes {stable_mosaic.version = 11 : i64} {
  func.func @_sobelxy_kernel(%arg0: i32, %arg1: memref<2x256xf32, #tpu.memory_space<vmem>>, %arg2: memref<2x256xf32, #tpu.memory_space<vmem>>) attributes {dimension_semantics = [#tpu.dimension_semantics<parallel>], iteration_bounds = array<i64: 1>, scalar_prefetch = 0 : i64, scratch_operands = 0 : i64, tpu.core_type = #tpu.core_type<tc>, window_params = [{transform_indices = @transform_0, window_bounds = array<i64: 2, 256>}, {transform_indices = @transform_1, window_bounds = array<i64: 2, 256>}]} {
    %c0 = arith.constant 0 : index
    %c0_0 = arith.constant 0 : index
    %0 = vector.load %arg1[%c0, %c0_0] : memref<2x256xf32, #tpu.memory_space<vmem>>, vector<2x256xf32>
    %1 = tpu.iota {dimensions = array<i32: 1>} : vector<2x256xi32>
    %c15_i32 = arith.constant 15 : i32
    %2 = vector.broadcast %c15_i32 : i32 to vector<2x256xi32>
    %3 = arith.andi %1, %2 : vector<2x256xi32>
    %c0_i32 = arith.constant 0 : i32
    %4 = vector.broadcast %c0_i32 : i32 to vector<2x256xi32>
    %5 = arith.cmpi sgt, %3, %4 : vector<2x256xi32>
    %c1_i32 = arith.constant 1 : i32
    %6 = tpu.dynamic_rotate %0 by %c1_i32 dim 1 : vector<2x256xf32>, i32 -> vector<2x256xf32>
    %cst = arith.constant 0.000000e+00 : f32
    %7 = vector.broadcast %cst : f32 to vector<2x256xf32>
    %8 = arith.select %5, %6, %7 : vector<2x256xi1>, vector<2x256xf32>
    %c15_i32_1 = arith.constant 15 : i32
    %9 = vector.broadcast %c15_i32_1 : i32 to vector<2x256xi32>
    %10 = arith.cmpi slt, %3, %9 : vector<2x256xi32>
    %c255_i32 = arith.constant 255 : i32
    %11 = tpu.dynamic_rotate %0 by %c255_i32 dim 1 : vector<2x256xf32>, i32 -> vector<2x256xf32>
    %cst_2 = arith.constant 0.000000e+00 : f32
    %12 = vector.broadcast %cst_2 : f32 to vector<2x256xf32>
    %13 = arith.select %10, %11, %12 : vector<2x256xi1>, vector<2x256xf32>
    %14 = arith.subf %13, %8 : vector<2x256xf32>
    %cst_3 = arith.constant 2.000000e+00 : f32
    %15 = vector.broadcast %cst_3 : f32 to vector<2x256xf32>
    %16 = arith.mulf %15, %0 : vector<2x256xf32>
    %17 = arith.addf %8, %16 : vector<2x256xf32>
    %18 = arith.addf %17, %13 : vector<2x256xf32>
    %c16_i32 = arith.constant 16 : i32
    %19 = vector.broadcast %c16_i32 : i32 to vector<2x256xi32>
    %20 = arith.cmpi sge, %1, %19 : vector<2x256xi32>
    %c240_i32 = arith.constant 240 : i32
    %21 = vector.broadcast %c240_i32 : i32 to vector<2x256xi32>
    %22 = arith.cmpi slt, %1, %21 : vector<2x256xi32>
    %c16_i32_4 = arith.constant 16 : i32
    %23 = tpu.dynamic_rotate %14 by %c16_i32_4 dim 1 : vector<2x256xf32>, i32 -> vector<2x256xf32>
    %cst_5 = arith.constant 0.000000e+00 : f32
    %24 = vector.broadcast %cst_5 : f32 to vector<2x256xf32>
    %25 = arith.select %20, %23, %24 : vector<2x256xi1>, vector<2x256xf32>
    %c240_i32_6 = arith.constant 240 : i32
    %26 = tpu.dynamic_rotate %14 by %c240_i32_6 dim 1 : vector<2x256xf32>, i32 -> vector<2x256xf32>
    %cst_7 = arith.constant 0.000000e+00 : f32
    %27 = vector.broadcast %cst_7 : f32 to vector<2x256xf32>
    %28 = arith.select %22, %26, %27 : vector<2x256xi1>, vector<2x256xf32>
    %cst_8 = arith.constant 2.000000e+00 : f32
    %29 = vector.broadcast %cst_8 : f32 to vector<2x256xf32>
    %30 = arith.mulf %29, %14 : vector<2x256xf32>
    %31 = arith.addf %25, %30 : vector<2x256xf32>
    %32 = arith.addf %31, %28 : vector<2x256xf32>
    %c16_i32_9 = arith.constant 16 : i32
    %33 = tpu.dynamic_rotate %18 by %c16_i32_9 dim 1 : vector<2x256xf32>, i32 -> vector<2x256xf32>
    %cst_10 = arith.constant 0.000000e+00 : f32
    %34 = vector.broadcast %cst_10 : f32 to vector<2x256xf32>
    %35 = arith.select %20, %33, %34 : vector<2x256xi1>, vector<2x256xf32>
    %c240_i32_11 = arith.constant 240 : i32
    %36 = tpu.dynamic_rotate %18 by %c240_i32_11 dim 1 : vector<2x256xf32>, i32 -> vector<2x256xf32>
    %cst_12 = arith.constant 0.000000e+00 : f32
    %37 = vector.broadcast %cst_12 : f32 to vector<2x256xf32>
    %38 = arith.select %22, %36, %37 : vector<2x256xi1>, vector<2x256xf32>
    %39 = arith.subf %35, %38 : vector<2x256xf32>
    %40 = math.absf %32 : vector<2x256xf32>
    %41 = math.absf %39 : vector<2x256xf32>
    %42 = arith.addf %40, %41 : vector<2x256xf32>
    %c0_13 = arith.constant 0 : index
    %c0_14 = arith.constant 0 : index
    %43 = vector.load %arg2[%c0_13, %c0_14] : memref<2x256xf32, #tpu.memory_space<vmem>>, vector<2x256xf32>
    tpu.vector_store %arg2[%c0_13, %c0_14], %42 {strides = array<i32>} : memref<2x256xf32, #tpu.memory_space<vmem>>, vector<2x256xf32>,
    return
  }
  func.func @transform_0(%arg0: i32) -> (i32, i32) {
    %c0_i32 = arith.constant 0 : i32
    %c0_i32_0 = arith.constant 0 : i32
    return %arg0, %c0_i32 : i32, i32
  }
  func.func @transform_1(%arg0: i32) -> (i32, i32) {
    %c0_i32 = arith.constant 0 : i32
    %c0_i32_0 = arith.constant 0 : i32
    return %arg0, %c0_i32 : i32, i32
  }
}

</mosaic_0001>

<bundles_post_ra>
// kernel: tpu_custom_call.1
= control target key start
LH: loop header
LB: loop body
LE: loop exit
PB: predicated region body
PF: predicated region fallthrough
CT: control target
= control target key end

     0   :  { %6 = vsyncpa [#allocation3], 0  ;;  %s291_s0 = inlined_call_operand.hbm [shape: f32[2,256], index: 0, kind: input, shape index: {}]   ;;  %s292_s1 = inlined_call_operand.hbm [shape: f32[2,256], index: 1, kind: output, shape index: {}]  }
   0x1   :  { %7 = vsyncpa [#allocation4], 0  ;;  %s213_s6 = smov [#allocation2]   ;;  %s165_s10 = scalar_lea.hbm %s291_s0, 64 }
   0x2   :  { %s14_s7 = sshll.u32 %s213_s6, 4  ;;  %p166_p0 = scmp.ne.s32.totalorder %s291_s0, %s165_s10  ;;  %s15_s7 = int_to_ptr.vmem [resolvable:$true] %s14_s7 }
   0x3   :  { %p169_p1 = scmp.lt.u32.totalorder %s165_s10, %s291_s0 }
   0x5   :  { %p171_p2 = pnand %p169_p1, %p166_p0 }
   0x7   :  { %174 = shalt.err (!%p171_p2)
}
   0x8   :  { %s175_s15 = scalar_lea.vmem %s15_s7, 64  ;;  %p180_p4 = scmp.lt.s32.totalorder %s15_s7, %s15_s7 }
   0x9   :  { %p176_p3 = scmp.ne.s32.totalorder %s15_s7, %s175_s15  ;;  %p181_p5 = scmp.lt.s32.totalorder %s175_s15, %s175_s15 }
   0xb   :  { %p182_p6 = por %p181_p5, %p180_p4 }
   0xd   :  { %p183_p7 = pnand %p182_p6, %p176_p3 }
   0xf   :  { %186 = shalt.err (!%p183_p7)
}
  0x10   :  { %17 = dma.hbm_to_vmem [thread:$0]  %s291_s0, 64, %s15_s7, [#allocation3]  }
  0x11   :  { %209 = dma.done.wait [#allocation3], 64  }
  0x12   :  { %210 = vsyncadd [#allocation3], 4294967232  ;;  %v22_v0 = vlaneseq  ;;  %v214_v1 = vmov 1983009808   ;;  %v21_v6 = vld [vmem:[#allocation2] sm:$0xf] }
  0x13   :  { %v31_v2 = vunpack.c.l.s4 %v214_v1  ;;  %v62_v8 = vmul.f32 2.0, %v21_v6  ;;  %s215_s18 = smov 127   ;;  %s216_s19 = smov 1  }
  0x14   :  { %v34_v3 = vshrl.u32 %v22_v0, 7  ;;  %v242_v11 = vand.u32 127, %v22_v0  ;;  %s217_s0 = smov 16   ;;  %s218_s20 = smov 112  }
  0x15   :  { %v32_v4 = vunpack.c.0.s8 %v31_v2  ;;  %s219_s21 = smov [#allocation5]  }
  0x16   :  { %v245_v12 = vadd.s32 128, %v242_v11  ;;  %v25_v13 = vand.u32 15, %v242_v11  ;;  %vm55_vm0 = vcmp.lt.s32.totalorder %v242_v11, 127  ;;  %vm44_vm1 = vcmp.lt.s32.totalorder %v242_v11, 1  ;;  %s148_s22 = sshll.u32 %s219_s21, 4  ;;  %s149_s22 = int_to_ptr.vmem [resolvable:$true] %s148_s22 }
  0x17   :  { %v35_v5 = vsub.s32 %v32_v4, %v34_v3  ;;  %vm86_vm6 = vcmp.lt.s32.totalorder %v242_v11, 16  ;;  %vm78_vm7 = vcmp.ge.s32.totalorder %v242_v11, 16  ;;  %vm95_vm8 = vcmp.lt.s32.totalorder %v242_v11, 112  ;;  %s187_s23 = scalar_lea.vmem %s149_s22, 64  ;;  %p192_p9 = scmp.lt.s32.totalorder %s149_s22, %s149_s22 }
  0x18   :  { %v26_v14 = vand.u32 15, %v245_v12  ;;  %vm49_vm2 = vcmp.lt.s32.totalorder %v25_v13, 15  ;;  %vm27_vm4 = vcmp.gt.s32.totalorder %v25_v13, 0  ;;  %vm81_vm9 = vcmp.lt.s32.totalorder %v245_v12, 240  ;;  %p188_p8 = scmp.ne.s32.totalorder %s149_s22, %s187_s23  ;;  %p193_p10 = scmp.lt.s32.totalorder %s187_s23, %s187_s23 }
  0x19   :  { %v36_v7 = vrot.slane %v21_v6, %v35_v5  ;;  %v70_v10 = vrot.slane %v62_v8, %v35_v5 }
  0x1a   :  { %vm50_vm3 = vcmp.lt.s32.totalorder %v26_v14, 15  ;;  %vm28_vm5 = vcmp.gt.s32.totalorder %v26_v14, 0  ;;  %p194_p11 = por %p193_p10, %p192_p9 }
  0x1b   :  { %51 = vrot.lane.b32.xlu1 %v36_v7, %s215_s18  ;;  %40 = vrot.lane.b32.xlu0 %v36_v7, %s216_s19  ;;  %v37_v9 = vcombine.high %v36_v7, %v36_v7  ;;  %v71_v27 = vcombine.high %v70_v10, %v70_v10 }
  0x1c   :  { %p195_p12 = pnand %p194_p11, %p188_p8 }
  0x1f   :  { %53 = vrot.lane.b32.xlu1 %v37_v9, %s215_s18  ;;  %42 = vrot.lane.b32.xlu0 %v37_v9, %s216_s19 }
  0x8d   :  { %v52_v15 = vpop.permute.xlu1 %51  ;;  %v41_v16 = vpop.permute.xlu0 %40 }
  0x91   :  { %v54_v17 = vpop.permute.xlu1 %53  ;;  %v43_v18 = vpop.permute.xlu0 %42 }
  0x92   :  { %v56_v19 = vsel %vm55_vm0, %v52_v15, %v54_v17  ;;  %v57_v20 = vsel %vm55_vm0, %v54_v17, %v52_v15  ;;  %v45_v21 = vsel %vm44_vm1, %v41_v16, %v43_v18  ;;  %v46_v22 = vsel %vm44_vm1, %v43_v18, %v41_v16 }
  0x93   :  { %v58_v23 = vsel %vm49_vm2, %v56_v19, 0.0  ;;  %v59_v24 = vsel %vm50_vm3, %v57_v20, 0.0  ;;  %v47_v25 = vsel %vm27_vm4, %v46_v22, 0.0  ;;  %v48_v26 = vsel %vm28_vm5, %v45_v21, 0.0 }
  0x94   :  { %v60_v28 = vsub.f32 %v58_v23, %v47_v25  ;;  %v61_v29 = vsub.f32 %v59_v24, %v48_v26  ;;  %v74_v30 = vadd.f32 %v70_v10, %v47_v25  ;;  %v75_v31 = vadd.f32 %v71_v27, %v48_v26 }
  0x96   :  { %82 = vrot.lane.b32.xlu0 %v60_v28, %s217_s0  ;;  %84 = vrot.lane.b32.xlu1 %v61_v29, %s217_s0  ;;  %v76_v32 = vadd.f32 %v74_v30, %v58_v23  ;;  %v77_v33 = vadd.f32 %v75_v31, %v59_v24  ;;  %v100_v40 = vmul.f32 2.0, %v60_v28  ;;  %v101_v46 = vmul.f32 2.0, %v61_v29 }
  0x9a   :  { %91 = vrot.lane.b32.xlu0 %v60_v28, %s218_s20  ;;  %93 = vrot.lane.b32.xlu1 %v61_v29, %s218_s20 }
  0x9e   :  { %106 = vrot.lane.b32.xlu0 %v76_v32, %s217_s0  ;;  %108 = vrot.lane.b32.xlu1 %v77_v33, %s217_s0 }
  0xa2   :  { %114 = vrot.lane.b32.xlu0 %v76_v32, %s218_s20  ;;  %116 = vrot.lane.b32.xlu1 %v77_v33, %s218_s20 }
 0x108   :  { %v83_v34 = vpop.permute.xlu0 %82  ;;  %v85_v35 = vpop.permute.xlu1 %84 }
 0x109   :  { %v88_v36 = vsel %vm86_vm6, %v85_v35, %v83_v34  ;;  %v87_v42 = vsel %vm86_vm6, %v83_v34, %v85_v35 }
 0x10a   :  { %v89_v39 = vsel %vm78_vm7, %v88_v36, 0.0  ;;  %v103_v50 = vadd.f32 %v101_v46, %v87_v42 }
 0x10b   :  { %v102_v43 = vadd.f32 %v100_v40, %v89_v39 }
 0x10c   :  { %v92_v37 = vpop.permute.xlu0 %91  ;;  %v94_v38 = vpop.permute.xlu1 %93 }
 0x10d   :  { %v97_v41 = vsel %vm95_vm8, %v94_v38, %v92_v37  ;;  %v96_v47 = vsel %vm95_vm8, %v92_v37, %v94_v38 }
 0x10e   :  { %v99_v48 = vsel %vm81_vm9, %v97_v41, 0.0  ;;  %v104_v51 = vadd.f32 %v102_v43, %v96_v47 }
 0x10f   :  { %v105_v54 = vadd.f32 %v103_v50, %v99_v48 }
 0x110   :  { %v107_v44 = vpop.permute.xlu0 %106  ;;  %v109_v45 = vpop.permute.xlu1 %108  ;;  %v124_v62 = vand.u32 2147483647, %v104_v51 }
 0x111   :  { %v111_v49 = vsel %vm86_vm6, %v109_v45, %v107_v44  ;;  %v110_v58 = vsel %vm86_vm6, %v107_v44, %v109_v45  ;;  %v125_v0 = vand.u32 2147483647, %v105_v54 }
 0x112   :  { %v112_v55 = vsel %vm78_vm7, %v111_v49, 0.0 }
 0x114   :  { %v115_v52 = vpop.permute.xlu0 %114  ;;  %v117_v53 = vpop.permute.xlu1 %116 }
 0x115   :  { %v118_v56 = vsel %vm95_vm8, %v115_v52, %v117_v53  ;;  %v119_v57 = vsel %vm95_vm8, %v117_v53, %v115_v52 }
 0x116   :  { %v121_v59 = vsel %vm81_vm9, %v119_v57, 0.0  ;;  %v122_v60 = vsub.f32 %v112_v55, %v118_v56 }
 0x117   :  { %v123_v61 = vsub.f32 %v110_v58, %v121_v59 }
 0x118   :  { %v126_v63 = vand.u32 2147483647, %v122_v60 }
 0x119   :  { %v127_v1 = vand.u32 2147483647, %v123_v61 }
 0x11a   :  { %v128_v2 = vadd.f32 %v126_v63, %v124_v62 }
 0x11b   :  { %v129_v3 = vadd.f32 %v127_v1, %v125_v0 }
 0x11d   :  { %v132_v4 = vcombine.low %v128_v2, %v129_v3 }
 0x11f   :  { %157 = vst.sshfl [vmem:[#allocation5] sm:$0x33 pattern:$0x76325410] %v132_v4 }
 0x120   :  { %198 = shalt.err (!%p195_p12)
}
 0x121   :  { %s199_s26 = scalar_lea.hbm %s292_s1, 64 }
 0x122   :  { %p200_p13 = scmp.ne.s32.totalorder %s292_s1, %s199_s26  ;;  %p203_p0 = scmp.lt.u32.totalorder %s199_s26, %s292_s1 }
 0x124   :  { %p205_p1 = pnand %p203_p0, %p200_p13 }
 0x126   :  { %208 = shalt.err (!%p205_p1)
}
 0x127   :  { %151 = dma.vmem_to_hbm [thread:$0]  %s149_s22, 64, %s292_s1, [#allocation4]  }
 0x128   :  { %211 = dma.done.wait [#allocation4], 64  }
 0x129   :  { %212 = vsyncadd [#allocation4], 4294967232 }
 0x12a   :  { %155 = vsyncpa [#allocation3], 1 }
 0x12b   :  { %156 = vsyncpa [#allocation4], 1 }

</bundles_post_ra>
